<compile_context>
chip_gen: v7x
topology: tpu7x:2x2x1
jax: 0.10.0
libtpu: 0.0.40
codegen_flags: <defaults>
</compile_context>

<pallas_src>
import jax
import jax.numpy as jnp
from jax.experimental import pallas as pl
from jax.experimental.pallas import tpu as pltpu


_NORM_EPS = 1e-12  # matches torch.nn.functional.normalize default eps


def _make_proj_head_norm_kernel(compute_dtype):
    def _proj_head_norm_kernel(x_ref, w1_ref, b1_ref, w2_ref, b2_ref, o_ref):
        """Fused linear1 -> ReLU -> linear2 -> L2-normalize on one row tile.

        x_ref : (tm, D_in)   input dtype (cast to compute dtype in-kernel)
        w1_ref: (D_in, H)    weight dtype (cast in-kernel)
        b1_ref: (1, H)       f32
        w2_ref: (H, D_out)   weight dtype (cast in-kernel)
        b2_ref: (1, D_out)   f32
        o_ref : (tm, D_out)
        """
        # In-kernel casts are VPU work hidden under the x-tile DMA; reading the
        # operands in their original dtype avoids a separate HBM cast pass.
        x = x_ref[...].astype(compute_dtype)
        w1 = w1_ref[...].astype(compute_dtype)
        # Linear 1 (MXU, f32 accumulate) + bias + ReLU (f32 VPU — safe on v5e too).
        h = jnp.dot(x, w1, preferred_element_type=jnp.float32)
        h = jnp.maximum(h + b1_ref[...], 0.0)
        # Back to the compute dtype for the second MXU pass.
        h = h.astype(compute_dtype)
        w2 = w2_ref[...].astype(compute_dtype)
        # Linear 2 (MXU, f32 accumulate) + bias.
        y = jnp.dot(h, w2, preferred_element_type=jnp.float32) + b2_ref[...]
        # F.normalize(y, dim=-1) = y / max(||y||_2, eps).  Implemented as
        # y * rsqrt(max(ssq, eps^2)) — rsqrt runs on the EUP (free VLIW slot),
        # identical result for any row with ||y|| > eps.
        ssq = jnp.sum(y * y, axis=-1, keepdims=True)
        inv = jax.lax.rsqrt(jnp.maximum(ssq, _NORM_EPS * _NORM_EPS))
        o_ref[...] = (y * inv).astype(o_ref.dtype)

    return _proj_head_norm_kernel


def _round_up(n, m):
    return ((n + m - 1) // m) * m


def _pick_block_rows(B, requested):
    """Row tile: multiple of 16 (bf16 sublane pack), even #blocks when B allows."""
    br = max(16, (requested // 16) * 16)
    br = min(br, _round_up(B, 16))
    if B >= 32:
        nb = pl.cdiv(B, br)
        if nb < 2:
            nb = 2
        if nb % 2:
            nb += 1                       # balanced split across v7x's 2 TensorCores
        br = _round_up(pl.cdiv(B, nb), 16)
    if pl.cdiv(B, br) == 1:
        br = B                            # single full-extent block (always legal)
    return br


def encoder_head_forward(hidden, w1, b1, w2, b2, *, block_rows=512,
                         compute_dtype=jnp.bfloat16, out_dtype=jnp.bfloat16):
    """normalize(linear2(relu(linear1(hidden))), dim=-1).

    hidden: [B, D_in]     (pooled encoder hidden state, read from HBM as-is)
    w1:     [D_in, H]     (transpose of torch linear1.weight)
    b1:     [H]
    w2:     [H, D_out]    (transpose of torch linear2.weight)
    b2:     [D_out]
    """
    B, D_in = hidden.shape
    H = w1.shape[1]
    D_out = w2.shape[1]

    # --- row tile selection --------------------------------------------------
    br = _pick_block_rows(B, block_rows)
    num_blocks = pl.cdiv(B, br)           # ragged last block handled by Pallas

    # --- small operands (biases only; weights/input stay in caller dtype) ----
    b1_2d = b1.astype(jnp.float32).reshape(1, H)
    b2_2d = b2.astype(jnp.float32).reshape(1, D_out)

    # --- VMEM budget (48 MiB cap leaves headroom on v7x's 64 MiB / TC) -------
    in_size = jnp.dtype(hidden.dtype).itemsize
    w_size = jnp.dtype(w1.dtype).itemsize
    cd_size = jnp.dtype(compute_dtype).itemsize
    out_size = jnp.dtype(out_dtype).itemsize
    footprint = (
        2 * br * D_in * in_size                          # x tiles, double-buffered
        + br * D_in * cd_size                            # in-kernel bf16 copy of x
        + 2 * br * D_out * out_size                      # out tiles, double-buffered
        + (D_in * H + H * D_out) * (w_size + cd_size)    # weights + in-kernel copies
        + (H + D_out) * 4                                # biases
        + br * (H + D_out) * 4 + br * H * cd_size)       # f32 h/y + bf16 h intermediates
    vmem_limit = int(min(max(2 * footprint, 16 << 20), 48 << 20))

    cost = pl.CostEstimate(
        flops=2 * B * (D_in * H + H * D_out) + 5 * B * D_out,
        transcendentals=B,  # one rsqrt per row
        bytes_accessed=(B * D_in * in_size
                        + (D_in * H + H * D_out) * w_size
                        + (H + D_out) * 4
                        + B * D_out * out_size))

    # Constant-index weights/biases don't need double buffers; only use the
    # pipeline_mode knob when this jax version has it (no broad try/except).
    buffered_one = pl.Buffered(1) if hasattr(pl, "Buffered") else None

    def wspec(shape):
        if buffered_one is None:
            return pl.BlockSpec(shape, lambda i: (0, 0))
        return pl.BlockSpec(shape, lambda i: (0, 0), pipeline_mode=buffered_one)

    kernel = _make_proj_head_norm_kernel(compute_dtype)

    call = pl.pallas_call(
        kernel,
        out_shape=jax.ShapeDtypeStruct((B, D_out), out_dtype),
        grid_spec=pltpu.PrefetchScalarGridSpec(
            num_scalar_prefetch=0,
            grid=(num_blocks,),
            in_specs=[
                pl.BlockSpec((br, D_in), lambda i: (i, 0)),  # x tile (pipelined)
                wspec((D_in, H)),                            # w1 (resident)
                wspec((1, H)),                               # b1 (resident)
                wspec((H, D_out)),                           # w2 (resident)
                wspec((1, D_out)),                           # b2 (resident)
            ],
            out_specs=pl.BlockSpec((br, D_out), lambda i: (i, 0)),
        ),
        # TODO(synk): on v7x, verify "parallel" shards across the 2 TCs; switch to
        # pltpu.CORE_PARALLEL if profiling shows one core idle.
        compiler_params=pltpu.CompilerParams(
            dimension_semantics=("parallel",),
            vmem_limit_bytes=vmem_limit),
        cost_estimate=cost,
    )

    return call(hidden, w1, b1_2d, w2, b2_2d)


if __name__ == "__main__":
    # EncoderWrapper forward (post-encoder part):
    #   hidden = encoder(...)[0][:, 0, :]            -> provided as input [B, D_enc]
    #   proj   = ProjectionHead(D_enc, 128, 128)(hidden)
    #   out    = F.normalize(proj, dim=-1)
    batch = 128          # -> 2 row tiles of 64 (both v7x TensorCores get work)
    enc_hidden = 256     # small stand-in for encoder.config.hidden_size
    proj_hidden = 128    # ProjectionHead hidden_size (per module spec)
    proj_out = 128       # ProjectionHead output_size (lane-dense, multiple of 128)

    key = jax.random.PRNGKey(0)
    kx, kw1, kb1, kw2, kb2 = jax.random.split(key, 5)

    hidden = jax.random.normal(kx, (batch, enc_hidden), dtype=jnp.float32)

    # nn.Linear-style init; weights stored pre-transposed as [in, out].
    lim1 = 1.0 / (enc_hidden ** 0.5)
    lim2 = 1.0 / (proj_hidden ** 0.5)
    w1 = jax.random.uniform(kw1, (enc_hidden, proj_hidden), jnp.float32, -lim1, lim1)
    b1 = jax.random.uniform(kb1, (proj_hidden,), jnp.float32, -lim1, lim1)
    w2 = jax.random.uniform(kw2, (proj_hidden, proj_out), jnp.float32, -lim2, lim2)
    b2 = jax.random.uniform(kb2, (proj_out,), jnp.float32, -lim2, lim2)

    y = encoder_head_forward(hidden, w1, b1, w2, b2)
    y = jax.block_until_ready(y)
    assert y.shape == (batch, proj_out)
    assert y.dtype == jnp.bfloat16

    # Reference 1: same bf16-operand / f32-accumulate math in plain JAX (checks the kernel).
    xb = hidden.astype(jnp.bfloat16)
    h_m = jnp.maximum(
        jnp.dot(xb, w1.astype(jnp.bfloat16), preferred_element_type=jnp.float32) + b1, 0.0)
    y_m = jnp.dot(h_m.astype(jnp.bfloat16), w2.astype(jnp.bfloat16),
                  preferred_element_type=jnp.float32) + b2
    ref_matched = y_m * jax.lax.rsqrt(
        jnp.maximum(jnp.sum(y_m * y_m, axis=-1, keepdims=True), _NORM_EPS * _NORM_EPS))
    assert jnp.allclose(y.astype(jnp.float32), ref_matched, atol=1e-2, rtol=1e-2), \
        "mismatch vs bf16-matched reference"

    # Reference 2: full-f32 module semantics (loose tol absorbs bf16 operand/output casts).
    h_f = jnp.maximum(hidden @ w1 + b1, 0.0)
    y_f = h_f @ w2 + b2
    ref_f32 = y_f / jnp.maximum(jnp.sqrt(jnp.sum(y_f * y_f, axis=-1, keepdims=True)), _NORM_EPS)
    assert jnp.allclose(y.astype(jnp.float32), ref_f32, atol=5e-2, rtol=5e-2), \
        "mismatch vs f32 reference"

    print("KERNEL_OK")
</pallas_src>

<mosaic_0001>
module attributes {stable_mosaic.version = 11 : i64} {
  func.func @_proj_head_norm_kernel(%arg0: i32, %arg1: memref<64x256xf32, #tpu.memory_space<vmem>>, %arg2: memref<256x128xf32, #tpu.memory_space<vmem>>, %arg3: memref<1x128xf32, #tpu.memory_space<vmem>>, %arg4: memref<128x128xf32, #tpu.memory_space<vmem>>, %arg5: memref<1x128xf32, #tpu.memory_space<vmem>>, %arg6: memref<64x128xbf16, #tpu.memory_space<vmem>>) attributes {dimension_semantics = [#tpu.dimension_semantics<parallel>], iteration_bounds = array<i64: 2>, scalar_prefetch = 0 : i64, scratch_operands = 0 : i64, tpu.core_type = #tpu.core_type<tc>, window_params = [{transform_indices = @transform_0, window_bounds = array<i64: 64, 256>}, {pipeline_mode = #tpu.pipeline_mode<synchronous>, transform_indices = @transform_1, window_bounds = array<i64: 256, 128>}, {pipeline_mode = #tpu.pipeline_mode<synchronous>, transform_indices = @transform_2, window_bounds = array<i64: 1, 128>}, {pipeline_mode = #tpu.pipeline_mode<synchronous>, transform_indices = @transform_3, window_bounds = array<i64: 128, 128>}, {pipeline_mode = #tpu.pipeline_mode<synchronous>, transform_indices = @transform_4, window_bounds = array<i64: 1, 128>}, {transform_indices = @transform_5, window_bounds = array<i64: 64, 128>}]} {
    %c0 = arith.constant 0 : index
    %c0_0 = arith.constant 0 : index
    %0 = vector.load %arg1[%c0, %c0_0] : memref<64x256xf32, #tpu.memory_space<vmem>>, vector<64x256xf32>
    %1 = arith.truncf %0 : vector<64x256xf32> to vector<64x256xbf16>
    %c0_1 = arith.constant 0 : index
    %c0_2 = arith.constant 0 : index
    %2 = vector.load %arg2[%c0_1, %c0_2] : memref<256x128xf32, #tpu.memory_space<vmem>>, vector<256x128xf32>
    %3 = arith.truncf %2 : vector<256x128xf32> to vector<256x128xbf16>
    %cst = arith.constant dense<0.000000e+00> : vector<64x128xf32>
    %4 = tpu.matmul %1, %3, %cst {dimension_numbers = #tpu.dot_dimension_numbers<[1], [0], [0], [1], [0, 0, 1, 1], [], []>} : vector<64x256xbf16>, vector<256x128xbf16>, vector<64x128xf32> -> vector<64x128xf32>
    %c0_3 = arith.constant 0 : index
    %c0_4 = arith.constant 0 : index
    %5 = vector.load %arg3[%c0_3, %c0_4] : memref<1x128xf32, #tpu.memory_space<vmem>>, vector<1x128xf32>
    %6 = vector.broadcast %5 : vector<1x128xf32> to vector<64x128xf32>
    %7 = arith.addf %4, %6 : vector<64x128xf32>
    %cst_5 = arith.constant 0.000000e+00 : f32
    %8 = vector.broadcast %cst_5 : f32 to vector<64x128xf32>
    %9 = arith.maximumf %7, %8 : vector<64x128xf32>
    %10 = arith.truncf %9 : vector<64x128xf32> to vector<64x128xbf16>
    %c0_6 = arith.constant 0 : index
    %c0_7 = arith.constant 0 : index
    %11 = vector.load %arg4[%c0_6, %c0_7] : memref<128x128xf32, #tpu.memory_space<vmem>>, vector<128x128xf32>
    %12 = arith.truncf %11 : vector<128x128xf32> to vector<128x128xbf16>
    %cst_8 = arith.constant dense<0.000000e+00> : vector<64x128xf32>
    %13 = tpu.matmul %10, %12, %cst_8 {dimension_numbers = #tpu.dot_dimension_numbers<[1], [0], [0], [1], [0, 0, 1, 1], [], []>} : vector<64x128xbf16>, vector<128x128xbf16>, vector<64x128xf32> -> vector<64x128xf32>
    %c0_9 = arith.constant 0 : index
    %c0_10 = arith.constant 0 : index
    %14 = vector.load %arg5[%c0_9, %c0_10] : memref<1x128xf32, #tpu.memory_space<vmem>>, vector<1x128xf32>
    %15 = vector.broadcast %14 : vector<1x128xf32> to vector<64x128xf32>
    %16 = arith.addf %13, %15 : vector<64x128xf32>
    %17 = arith.mulf %16, %16 : vector<64x128xf32>
    %cst_11 = arith.constant dense<0.000000e+00> : vector<64xf32>
    %18 = vector.multi_reduction <add>, %17, %cst_11 [1] : vector<64x128xf32> to vector<64xf32>
    %19 = vector.shape_cast %18 : vector<64xf32> to vector<64x1xf32>
    %cst_12 = arith.constant 1.000000e-24 : f32
    %20 = vector.broadcast %cst_12 : f32 to vector<64x1xf32>
    %21 = arith.maximumf %19, %20 : vector<64x1xf32>
    %22 = math.rsqrt %21 : vector<64x1xf32>
    %23 = vector.broadcast %22 : vector<64x1xf32> to vector<64x128xf32>
    %24 = arith.mulf %16, %23 : vector<64x128xf32>
    %25 = arith.truncf %24 : vector<64x128xf32> to vector<64x128xbf16>
    %c0_13 = arith.constant 0 : index
    %c0_14 = arith.constant 0 : index
    %26 = vector.load %arg6[%c0_13, %c0_14] : memref<64x128xbf16, #tpu.memory_space<vmem>>, vector<64x128xbf16>
    tpu.vector_store %arg6[%c0_13, %c0_14], %25 {strides = array<i32>} : memref<64x128xbf16, #tpu.memory_space<vmem>>, vector<64x128xbf16>,
    return
  }
  func.func @transform_0(%arg0: i32) -> (i32, i32) {
    %c0_i32 = arith.constant 0 : i32
    %c0_i32_0 = arith.constant 0 : i32
    return %arg0, %c0_i32 : i32, i32
  }
  func.func @transform_1(%arg0: i32) -> (i32, i32) {
    %c0_i32 = arith.constant 0 : i32
    %c0_i32_0 = arith.constant 0 : i32
    %c0_i32_1 = arith.constant 0 : i32
    return %c0_i32, %c0_i32_0 : i32, i32
  }
  func.func @transform_2(%arg0: i32) -> (i32, i32) {
    %c0_i32 = arith.constant 0 : i32
    %c0_i32_0 = arith.constant 0 : i32
    %c0_i32_1 = arith.constant 0 : i32
    return %c0_i32, %c0_i32_0 : i32, i32
  }
  func.func @transform_3(%arg0: i32) -> (i32, i32) {
    %c0_i32 = arith.constant 0 : i32
    %c0_i32_0 = arith.constant 0 : i32
    %c0_i32_1 = arith.constant 0 : i32
    return %c0_i32, %c0_i32_0 : i32, i32
  }
  func.func @transform_4(%arg0: i32) -> (i32, i32) {
    %c0_i32 = arith.constant 0 : i32
    %c0_i32_0 = arith.constant 0 : i32
    %c0_i32_1 = arith.constant 0 : i32
    return %c0_i32, %c0_i32_0 : i32, i32
  }
  func.func @transform_5(%arg0: i32) -> (i32, i32) {
    %c0_i32 = arith.constant 0 : i32
    %c0_i32_0 = arith.constant 0 : i32
    return %arg0, %c0_i32 : i32, i32
  }
}

</mosaic_0001>

<bundles_post_ra>
// kernel: tpu_custom_call.1
= control target key start
LH: loop header
LB: loop body
LE: loop exit
PB: predicated region body
PF: predicated region fallthrough
CT: control target
= control target key end

     0   :  { %10 = vsyncpa [#allocation3], 0  ;;  %s1407_s0 = inlined_call_operand.hbm [shape: f32[128,256], index: 0, kind: input, shape index: {}]   ;;  %s1408_s1 = inlined_call_operand.hbm [shape: f32[256,128], index: 1, kind: input, shape index: {}]   ;;  %s1409_s2 = inlined_call_operand.vmem [shape: f32[1,128], index: 2, kind: input, shape index: {}]   ;;  %s1410_s3 = inlined_call_operand.hbm [shape: f32[128,128], index: 3, kind: input, shape index: {}]   ;;  %s1411_s4 = inlined_call_operand.vmem [shape: f32[1,128], index: 4, kind: input, shape index: {}]   ;;  %s1412_s5 = inlined_call_operand.hbm [shape: bf16[128,128], index: 5, kind: output, shape index: {}]  }
   0x1   :  { %12 = vsyncpa [#allocation3 + $0x1], 0 }
   0x2   :  { %13 = vsyncpa [#allocation6], 0 }
   0x3   :  { %14 = vsyncpa [#allocation4], 0 }
   0x4   :  { %16 = vsyncpa [#allocation4 + $0x1], 0  ;;  %s1148_s18 = smov 0   ;;  %s1150_s19 = smov 0  }
   0x5   :  { %s1152_s20 = smov 0   ;;  %s1154_s21 = smov 0  }
   0x6 LB: > { %s1169_s22 = sadd.s32 4294967295, %s1106_s21   ;;  %s722_s23 = sadd.s32 4294967294, %s1106_s21   ;;  %s1106_s21 = sphi %s1154_s21, %s1432_s21   ;;  %s1102_s20 = sphi %s1152_s20, %s1431_s20   ;;  %s1098_s19 = sphi %s1150_s19, %s1430_s19   ;;  %s1094_s18 = sphi %s1148_s18, %s1429_s18  }
   0x7   : > { %p42_p0 = scmp.ne.s32.totalorder %s1098_s19, %s1094_s18  ;;  %p1413_p1 = scmp.eq.s32.totalorder %s1169_s22, 0 }
   0x8   : > { %p156_p3 = scmp.eq.s32.totalorder %s722_s23, 1  ;;  %p723_p5 = scmp.ge.s32.totalorder %s1106_s21, 1 }
   0x9   : > { %p1178_p4 = por %p1413_p1, %p42_p0  ;;  %p163_p7 = scmp.lt.s32.totalorder %s1106_s21, 3 }
   0xa   : > { %p1183_p6 = por %p156_p3, %p42_p0  ;;  %s1108_s27 = smov [#allocation5]  }
   0xb   : > { %s1416_s24 = scalar_select %p1178_p4, 1, 0 }
   0xc   : > { %s1417_s25 = scalar_select %p1183_p6, 1, 0 }
   0xd   : > { %p1188_p8 = pnand %p723_p5, %p163_p7  ;;  %s175_s28 = sshll.u32 %s1108_s27, 4  ;;  %s1192_s28 = int_to_ptr.vmem [resolvable:$true] %s175_s28 }
   0xe   : > { %s1109_s30 = smov [#allocation7]   ;;  %s950_s9 = scalar_lea.hbm %s1408_s1, 4096 }
   0xf   : > { %p873_p9 = pneg %p1188_p8  ;;  %s191_s6 = sshll.u32 %s1109_s30, 4  ;;  %s1203_s6 = int_to_ptr.vmem [resolvable:$true] %s191_s6 }
  0x10   : > { %p951_p12 = scmp.ne.s32.totalorder %s1408_s1, %s950_s9  ;;  %p957_p5 = scmp.lt.u32.totalorder %s950_s9, %s1408_s1 }
  0x11   : > { %p1199_p11 = pnand %p873_p9, %p1413_p1 }
  0x13   : > { %p952_p13 = pneg %p1199_p11 }
  0x15   : > { %p953_p0 = pnand %p952_p13, %p951_p12 }
  0x17   : > { %p954_p3 = pneg %p953_p0 }
  0x19   : > { %p959_p7 = pnand %p957_p5, %p954_p3 }
  0x1b   : > { %962 = shalt.err (!%p959_p7)
}
  0x1c   : > { %s963_s14 = scalar_lea.vmem %s1192_s28, 4096  ;;  %p971_p2 = scmp.lt.s32.totalorder %s1192_s28, %s1192_s28 }
  0x1d   : > { %p964_p9 = scmp.ne.s32.totalorder %s1192_s28, %s963_s14  ;;  %p972_p12 = scmp.lt.s32.totalorder %s963_s14, %s963_s14 }
  0x1f   : > { %p966_p10 = pnand %p964_p9, %p952_p13  ;;  %p973_p0 = por %p972_p12, %p971_p2 }
  0x21   : > { %p967_p1 = pneg %p966_p10 }
  0x23   : > { %p974_p6 = pnand %p973_p0, %p967_p1 }
  0x25   : > { %977 = shalt.err (!%p974_p6)
}
  0x26   : > { %s1110_s15 = smov 128   ;;  %s1111_s16 = smov 8  }
  0x27   : > { %876 = dma.hbm_to_vmem [thread:$0]  (!%p1199_p11), %s1408_s1, 4096, %s1192_s28, [#allocation6], %s1110_s15, %s1110_s15, %s1111_s16  }
  0x28   : > { %s978_s7 = scalar_lea.hbm %s1410_s3, 2048 }
  0x29   : > { %p979_p2 = scmp.ne.s32.totalorder %s1410_s3, %s978_s7  ;;  %p985_p10 = scmp.lt.u32.totalorder %s978_s7, %s1410_s3 }
  0x2b   : > { %p981_p1 = pnand %p979_p2, %p952_p13 }
  0x2d   : > { %p982_p6 = pneg %p981_p1 }
  0x2f   : > { %p987_p3 = pnand %p985_p10, %p982_p6 }
  0x31   : > { %990 = shalt.err (!%p987_p3)
}
  0x32   : > { %s991_s28 = scalar_lea.vmem %s1203_s6, 2048  ;;  %p999_p12 = scmp.lt.s32.totalorder %s1203_s6, %s1203_s6 }
  0x33   : > { %p992_p5 = scmp.ne.s32.totalorder %s1203_s6, %s991_s28  ;;  %p1000_p0 = scmp.lt.s32.totalorder %s991_s28, %s991_s28 }
  0x35   : > { %p994_p7 = pnand %p992_p5, %p952_p13  ;;  %p1001_p2 = por %p1000_p0, %p999_p12 }
  0x37   : > { %p995_p9 = pneg %p994_p7 }
  0x39   : > { %p1002_p1 = pnand %p1001_p2, %p995_p9 }
  0x3b   : > { %1005 = shalt.err (!%p1002_p1)
}
  0x3c   : > { %879 = dma.hbm_to_vmem [thread:$0]  (!%p1199_p11), %s1410_s3, 2048, %s1203_s6, [#allocation6], %s1110_s15, %s1110_s15, %s1111_s16  }
  0x3d   : > { %s1258_s14 = sadd.s32 1, %s1106_s21   ;;  %s29_s29 = sadd.s32 1, %s1102_s20 }
  0x3e   : > { %s26_s17 = ssub.s32 %s1106_s21, %s1258_s14  ;;  %p36_p13 = scmp.ne.s32.totalorder %s1102_s20, %s1098_s19 }
  0x3f   : > { %p27_p6 = scmp.eq.s32.totalorder %s26_s17, 0  ;;  %p37_p10 = scmp.eq.s32.totalorder %s1106_s21, 0 }
  0x40   : > { %p1420_p3 = scmp.eq.s32.totalorder %s1169_s22, 1  ;;  %p890_p7 = scmp.lt.s32.totalorder %s1106_s21, 2 }
  0x41   : > { %s1274_s27 = scalar_select %p27_p6, %s1102_s20, %s29_s29  }
  0x42   : > { %p1268_p5 = por %p1420_p3, %p36_p13  ;;  %p38_p9 = por %p37_p10, %p36_p13 }
  0x43   : > { %s208_s30 = sand.u32 1, %s1102_s20   ;;  %s752_s6 = sshll.u32 %s1106_s21, 11 }
  0x44   : > { %s1421_s23 = scalar_select %p1268_p5, 1, 0 }
  0x45   : > { %s727_s7 = sshll.u32 %s208_s30, 7  ;;  %s1281_s8 = scalar_lea.hbm %s1407_s0, %s752_s6 }
  0x46   : > { %s212_s9 = scalar_lea.vmem [#allocation2], %s727_s7  ;;  %p1285_p11 = pnand %p890_p7, %p38_p9 }
  0x47   : > { %s220_s10 = sshll.u32 %s212_s9, 4  ;;  %s1289_s28 = scalar_lea.sflag [#allocation3], %s208_s30  ;;  %s1283_s10 = int_to_ptr.vmem [resolvable:$true] %s220_s10 }
  0x48   : > { %s1006_s12 = scalar_lea.hbm %s1281_s8, 2048  ;;  %p1008_p0 = pneg %p1285_p11 }
  0x49   : > { %p1007_p12 = scmp.ne.s32.totalorder %s1281_s8, %s1006_s12  ;;  %s1011_s17 = scalar_lea.hbm %s1407_s0, 4096 }
  0x4a   : > { %p1012_p13 = scmp.lt.u32.totalorder %s1281_s8, %s1407_s0  ;;  %p1013_p6 = scmp.lt.u32.totalorder %s1011_s17, %s1006_s12 }
  0x4b   : > { %p1009_p2 = pnand %p1008_p0, %p1007_p12  ;;  %p1015_p3 = scmp.lt.u32.totalorder %s1006_s12, %s1281_s8 }
  0x4c   : > { %p1014_p10 = por %p1013_p6, %p1012_p13 }
  0x4d   : > { %p1010_p1 = pneg %p1009_p2 }
  0x4e   : > { %p1016_p7 = por %p1015_p3, %p1014_p10 }
  0x50   : > { %p1017_p9 = pnand %p1016_p7, %p1010_p1 }
  0x52   : > { %1020 = shalt.err (!%p1017_p9)
}
  0x53   : > { %s1021_s30 = scalar_lea.vmem %s1283_s10, 2048  ;;  %s1112_s15 = smov [#allocation2]  }
  0x54   : > { %p1022_p12 = scmp.ne.s32.totalorder %s1283_s10, %s1021_s30  ;;  %s1026_s16 = sshll.u32 %s1112_s15, 4  ;;  %s1027_s16 = int_to_ptr.vmem [resolvable:$false] %s1026_s16 }
  0x55   : > { %s1028_s9 = scalar_lea.vmem %s1027_s16, 4096  ;;  %p1029_p4 = scmp.lt.s32.totalorder %s1283_s10, %s1027_s16 }
  0x56   : > { %p1024_p2 = pnand %p1022_p12, %p1008_p0  ;;  %p1030_p13 = scmp.lt.s32.totalorder %s1028_s9, %s1021_s30 }
  0x58   : > { %p1025_p5 = pneg %p1024_p2  ;;  %p1031_p6 = por %p1030_p13, %p1029_p4 }
  0x5a   : > { %p1032_p10 = pnand %p1031_p6, %p1025_p5 }
  0x5c   : > { %1035 = shalt.err (!%p1032_p10)
}
  0x5d   : > { %s1113_s12 = smov 256   ;;  %s1114_s13 = smov 16  }
  0x5e   : > { %883 = dma.hbm_to_vmem [thread:$0]  (!%p1285_p11), %s1281_s8, 2048, %s1283_s10, %s1289_s28, %s1113_s12, %s1113_s12, %s1114_s13  }
  0x5f   : > { %232 = sbr.rel (%p1188_p8) target bundleno = 785 (0x311), region = 40  ;;  %s1320_s29 = sand.u32 (!%p1188_p8), 1, %s1098_s19  }
  0x60   : > { %s732_s17 = sshll.u32 (!%p1188_p8), %s1320_s29, 7  ;;  %s235_s7 = scalar_lea.sflag (!%p1188_p8), [#allocation3], %s1320_s29 }
  0x61   : > { %s1324_s6 = scalar_lea.vmem (!%p1188_p8), [#allocation2], %s732_s17  ;;  %p1423_p4 = scmp.ne.s32.totalorder (!%p1188_p8), %s1416_s24, 0 }
  0x66   : > { %1081 = dma.done.wait (%p1423_p4), %s235_s7, 2048  }
  0x67   : > { %1083 = vsyncadd (%p1423_p4), %s235_s7, 4294965248  ;;  %p1424_p5 = scmp.eq.s32.totalorder %s1169_s22, 0 }
  0x69   : > { %1085 = dma.done.wait (%p1424_p5), [#allocation6], 6144   ;;  %p1425_p8 = pmov %p1424_p5 }
  0x6a   : > { %v316_v0 = vld [vmem:[#allocation5 + $0x80] sm:$0xff]  ;;  %v317_v1 = vld [vmem:[#allocation5 + $0x88] sm:$0xff]  ;;  %v318_v5 = vld [vmem:[#allocation5 + $0x90] sm:$0xff]  ;;  %s735_s11 = sshll.u32 %s1320_s29, 5  ;;  %s761_s30 = sshll.u32 %s1169_s22, 9 }
  0x6b   : > { %1087 = vsyncadd (%p1425_p8), [#allocation6], 4294961152  ;;  %v300_v2 = vld [vmem:[#allocation5] sm:$0xff]  ;;  %v340_v3 = vpack.c.bf16 %v317_v1, %v316_v0  ;;  %v301_v4 = vld [vmem:[#allocation5 + $0x8] sm:$0xff]  ;;  %s272_s28 = scalar_lea.vmem [#allocation8], %s735_s11  ;;  %s1361_s12 = scalar_lea.hbm %s1412_s5, %s761_s30 }
  0x6c   : > { %v319_v6 = vld [vmem:[#allocation5 + $0x98] sm:$0xff]  ;;  %v332_v7 = vpack.c.bf16 %v301_v4, %v300_v2  ;;  %v302_v9 = vld [vmem:[#allocation5 + $0x10] sm:$0xff]  ;;  %v320_v11 = vld [vmem:[#allocation5 + $0xa0] sm:$0xff]  ;;  %s630_s15 = sshll.u32 %s272_s28, 4  ;;  %s617_s13 = scalar_lea.sflag [#allocation4], %s1320_s29  ;;  %s1363_s15 = int_to_ptr.vmem [resolvable:$true] %s630_s15 }
  0x6d   : > { %v341_v8 = vpack.c.bf16 %v319_v6, %v318_v5  ;;  %v303_v10 = vld [vmem:[#allocation5 + $0x18] sm:$0xff]  ;;  %785 = vmatprep.subr.bf16.mxu0 %v340_v3  ;;  %v321_v12 = vld [vmem:[#allocation5 + $0xa8] sm:$0xff]  ;;  %v304_v15 = vld [vmem:[#allocation5 + $0x20] sm:$0xff]  ;;  %s1036_s17 = scalar_lea.vmem %s1363_s15, 512  ;;  %p1426_p0 = scmp.ne.s32.totalorder %s1421_s23, 0 }
  0x6e   : > { %786 = vmatpush3.bf16.msra.mxu0 %v332_v7  ;;  %v333_v13 = vpack.c.bf16 %v303_v10, %v302_v9  ;;  %v342_v14 = vpack.c.bf16 %v321_v12, %v320_v11  ;;  %v305_v16 = vld [vmem:[#allocation5 + $0x28] sm:$0xff]  ;;  %v322_v17 = vld [vmem:[#allocation5 + $0xb0] sm:$0xff]  ;;  %v323_v18 = vld [vmem:[#allocation5 + $0xb8] sm:$0xff]  ;;  %p1037_p11 = scmp.ne.s32.totalorder %s1363_s15, %s1036_s17  ;;  %s1115_s22 = smov [#allocation8]  }
  0x6f   : > { %787 = vmatprep.subr.bf16.mxu0 %v341_v8  ;;  %v334_v19 = vpack.c.bf16 %v305_v16, %v304_v15  ;;  %v343_v20 = vpack.c.bf16 %v323_v18, %v322_v17  ;;  %v306_v21 = vld [vmem:[#allocation5 + $0x30] sm:$0xff]  ;;  %v307_v22 = vld [vmem:[#allocation5 + $0x38] sm:$0xff]  ;;  %v324_v23 = vld [vmem:[#allocation5 + $0xc0] sm:$0xff]  ;;  %s1040_s7 = sshll.u32 %s1115_s22, 4  ;;  %s1041_s7 = int_to_ptr.vmem [resolvable:$false] %s1040_s7 }
  0x70   : > { %v325_v24 = vld [vmem:[#allocation5 + $0xc8] sm:$0xff]  ;;  %v279_v26 = vld [vmem:[%s1324_s6 + $0x18] sm:$0xff]  ;;  %v335_v27 = vpack.c.bf16 %v307_v22, %v306_v21  ;;  %v308_v30 = vld [vmem:[#allocation5 + $0x40] sm:$0xff]  ;;  %p1038_p1 = pnand %p1037_p11, %p1426_p0  ;;  %p1043_p7 = scmp.lt.s32.totalorder %s1363_s15, %s1041_s7 }
  0x71   : > { %v277_v25 = vld [vmem:[%s1324_s6 + $0x8] sm:$0xff]  ;;  %v344_v29 = vpack.c.bf16 %v325_v24, %v324_v23  ;;  %v326_v32 = vld [vmem:[#allocation5 + $0xd0] sm:$0xff]  ;;  %v327_v33 = vld [vmem:[#allocation5 + $0xd8] sm:$0xff] }
  0x72   : > { %788 = vmatpush3.bf16.msra.mxu0 %v333_v13  ;;  %v293_v28 = vpack.c.bf16 %v279_v26, %v277_v25  ;;  %v309_v31 = vld [vmem:[#allocation5 + $0x48] sm:$0xff]  ;;  %v310_v34 = vld [vmem:[#allocation5 + $0x50] sm:$0xff]  ;;  %v432_v36 = vld [vmem:[#allocation7] sm:$0xff]  ;;  %v345_v39 = vpack.c.bf16 %v327_v33, %v326_v32  ;;  %p1039_p3 = pneg %p1038_p1 }
  0x73   : > { %789 = vmatprep.subr.bf16.mxu0 %v342_v14  ;;  %v336_v35 = vpack.c.bf16 %v309_v31, %v308_v30  ;;  %v433_v37 = vld [vmem:[#allocation7 + $0x8] sm:$0xff]  ;;  %v434_v38 = vld [vmem:[#allocation7 + $0x10] sm:$0xff]  ;;  %v311_v40 = vld [vmem:[#allocation5 + $0x58] sm:$0xff] }
  0x74   : > { %387 = vmatprep.mubr.bf16.mxu0 %v293_v28  ;;  %v328_v41 = vld [vmem:[#allocation5 + $0xe0] sm:$0xff]  ;;  %v448_v42 = vpack.c.bf16 %v433_v37, %v432_v36  ;;  %v435_v43 = vld [vmem:[#allocation7 + $0x18] sm:$0xff]  ;;  %v329_v44 = vld [vmem:[#allocation5 + $0xe8] sm:$0xff]  ;;  %v337_v48 = vpack.c.bf16 %v311_v40, %v310_v34 }
  0x75   : > { %v449_v45 = vpack.c.bf16 %v435_v43, %v434_v38  ;;  %v436_v46 = vld [vmem:[#allocation7 + $0x20] sm:$0xff]  ;;  %v437_v47 = vld [vmem:[#allocation7 + $0x28] sm:$0xff]  ;;  %v346_v49 = vpack.c.bf16 %v329_v44, %v328_v41  ;;  %v330_v53 = vld [vmem:[#allocation5 + $0xf0] sm:$0xff] }
  0x76   : > { %790 = vmatpush3.bf16.msra.mxu0 %v334_v19  ;;  %837 = vmatprep.subr.bf16.mxu1 %v448_v42  ;;  %v312_v50 = vld [vmem:[#allocation5 + $0x60] sm:$0xff]  ;;  %v313_v51 = vld [vmem:[#allocation5 + $0x68] sm:$0xff]  ;;  %v450_v52 = vpack.c.bf16 %v437_v47, %v436_v46  ;;  %v331_v54 = vld [vmem:[#allocation5 + $0xf8] sm:$0xff] }
  0x77   : > { %791 = vmatprep.subr.bf16.mxu0 %v343_v20  ;;  %838 = vmatpush3.bf16.msra.mxu1 %v448_v42  ;;  %v338_v55 = vpack.c.bf16 %v313_v51, %v312_v50  ;;  %v347_v56 = vpack.c.bf16 %v331_v54, %v330_v53  ;;  %v314_v57 = vld [vmem:[#allocation5 + $0x70] sm:$0xff]  ;;  %v315_v58 = vld [vmem:[#allocation5 + $0x78] sm:$0xff]  ;;  %v276_v60 = vld [vmem:[%s1324_s6] sm:$0xff] }
  0x78   : > { %839 = vmatprep.subr.bf16.mxu1 %v449_v45  ;;  %v339_v59 = vpack.c.bf16 %v315_v58, %v314_v57  ;;  %v278_v61 = vld [vmem:[%s1324_s6 + $0x10] sm:$0xff]  ;;  %v281_v62 = vld [vmem:[%s1324_s6 + $0x28] sm:$0xff]  ;;  %v283_v63 = vld [vmem:[%s1324_s6 + $0x38] sm:$0xff] }
  0x79   : > { %v292_v0 = vpack.c.bf16 %v278_v61, %v276_v60  ;;  %v295_v1 = vpack.c.bf16 %v283_v63, %v281_v62  ;;  %v280_v2 = vld [vmem:[%s1324_s6 + $0x20] sm:$0xff]  ;;  %v282_v3 = vld [vmem:[%s1324_s6 + $0x30] sm:$0xff]  ;;  %v285_v4 = vld [vmem:[%s1324_s6 + $0x48] sm:$0xff] }
  0x7a   : > { %792 = vmatpush3.bf16.msra.mxu0 %v335_v27  ;;  %v287_v5 = vld [vmem:[%s1324_s6 + $0x58] sm:$0xff]  ;;  %v294_v6 = vpack.c.bf16 %v282_v3, %v280_v2  ;;  %v284_v8 = vld [vmem:[%s1324_s6 + $0x40] sm:$0xff]  ;;  %v286_v9 = vld [vmem:[%s1324_s6 + $0x50] sm:$0xff] }
  0x7b   : > { %793 = vmatprep.subr.bf16.mxu0 %v344_v29  ;;  %840 = vmatpush3.bf16.msra.mxu1 %v449_v45  ;;  %v297_v7 = vpack.c.bf16 %v287_v5, %v285_v4  ;;  %v289_v10 = vld [vmem:[%s1324_s6 + $0x68] sm:$0xff]  ;;  %v291_v11 = vld [vmem:[%s1324_s6 + $0x78] sm:$0xff]  ;;  %v296_v12 = vpack.c.bf16 %v286_v9, %v284_v8  ;;  %v288_v14 = vld [vmem:[%s1324_s6 + $0x60] sm:$0xff] }
  0x7c   : > { %841 = vmatprep.subr.bf16.mxu1 %v450_v52  ;;  %v299_v13 = vpack.c.bf16 %v291_v11, %v289_v10  ;;  %v290_v15 = vld [vmem:[%s1324_s6 + $0x70] sm:$0xff]  ;;  %v439_v18 = vld [vmem:[#allocation7 + $0x38] sm:$0xff]  ;;  %v440_v20 = vld [vmem:[#allocation7 + $0x40] sm:$0xff]  ;;  %s1042_s6 = scalar_lea.vmem %s1041_s7, 1024 }
  0x7d   : > { %v298_v16 = vpack.c.bf16 %v290_v15, %v288_v14  ;;  %v438_v17 = vld [vmem:[#allocation7 + $0x30] sm:$0xff]  ;;  %v441_v21 = vld [vmem:[#allocation7 + $0x48] sm:$0xff]  ;;  %v443_v24 = vld [vmem:[#allocation7 + $0x58] sm:$0xff]  ;;  %p1044_p9 = scmp.lt.s32.totalorder %s1042_s6, %s1036_s17 }
  0x7e   : > { %794 = vmatpush3.bf16.msra.mxu0 %v336_v35  ;;  %v451_v19 = vpack.c.bf16 %v439_v18, %v438_v17  ;;  %v452_v22 = vpack.c.bf16 %v441_v21, %v440_v20  ;;  %v442_v23 = vld [vmem:[#allocation7 + $0x50] sm:$0xff]  ;;  %v444_v26 = vld [vmem:[#allocation7 + $0x60] sm:$0xff]  ;;  %v445_v27 = vld [vmem:[#allocation7 + $0x68] sm:$0xff] }
  0x7f   : > { %795 = vmatprep.subr.bf16.mxu0 %v345_v39  ;;  %842 = vmatpush3.bf16.msra.mxu1 %v450_v52  ;;  %v453_v25 = vpack.c.bf16 %v443_v24, %v442_v23  ;;  %v454_v28 = vpack.c.bf16 %v445_v27, %v444_v26  ;;  %v446_v29 = vld [vmem:[#allocation7 + $0x70] sm:$0xff]  ;;  %v447_v30 = vld [vmem:[#allocation7 + $0x78] sm:$0xff]  ;;  %v736_v34 = vld [vmem:[%s1409_s2] ss:$0 sm:$0xff]  ;;  %p1045_p12 = por %p1044_p9, %p1043_p7 }
  0x80   : > { %843 = vmatprep.subr.bf16.mxu1 %v451_v19  ;;  %v455_v31 = vpack.c.bf16 %v447_v30, %v446_v29 }
  0x81   : > { %p1046_p2 = pnand %p1045_p12, %p1039_p3 }
  0x82   : > { %796 = vmatpush3.bf16.msra.mxu0 %v337_v48 }
  0x83   : > { %797 = vmatprep.subr.bf16.mxu0 %v346_v49  ;;  %844 = vmatpush3.bf16.msra.mxu1 %v451_v19 }
  0x84   : > { %845 = vmatprep.subr.bf16.mxu1 %v452_v22 }
  0x86   : > { %798 = vmatpush3.bf16.msra.mxu0 %v338_v55 }
  0x87   : > { %799 = vmatprep.subr.bf16.mxu0 %v347_v56  ;;  %846 = vmatpush3.bf16.msra.mxu1 %v452_v22 }
  0x88   : > { %847 = vmatprep.subr.bf16.mxu1 %v453_v25 }
  0x8a   : > { %800 = vmatpush3.bf16.msra.mxu0 %v339_v59 }
  0x8b   : > { %848 = vmatpush3.bf16.msra.mxu1 %v453_v25 }
  0x8c   : > { %849 = vmatprep.subr.bf16.mxu1 %v454_v28 }
  0x8d   : > { %388 = vmatmul.mubr.bf16.vlgmr.msra.gmra.mrb[0].mxu0 %v292_v0 }
  0x8e   : > { %395 = vmatprep.mubr.bf16.mxu0 %v295_v1 }
  0x8f   : > { %850 = vmatpush3.bf16.msra.mxu1 %v454_v28 }
  0x90   : > { %851 = vmatprep.subr.bf16.mxu1 %v455_v31 }
  0x93   : > { %852 = vmatpush3.bf16.msra.mxu1 %v455_v31 }
  0x95   : > { %396 = vmatmul.mubr.bf16.gmra.mrb[4].mxu0 %v294_v6 }
  0x96   : > { %403 = vmatprep.mubr.bf16.mxu0 %v297_v7 }
  0x9d   : > { %404 = vmatmul.mubr.bf16.gmra.mrb[8].mxu0 %v296_v12 }
  0x9e   : > { %411 = vmatprep.mubr.bf16.mxu0 %v299_v13  ;;  %v737_v13 = vld [vmem:[%s1411_s4] ss:$0 sm:$0xff] }
  0xa5   : > { %412 = vmatmul.mubr.bf16.gmra.mrb[12].mxu0 %v298_v16 }
 0x160   : > { %v801_v32 = vpop.f32.mrb[0].mxu0 }
 0x161   : > { %v802_v33 = vpop.f32.mrb[1].mxu0 }
 0x162   : > { %v803_v35 = vadd.f32 %v802_v33, %v801_v32  ;;  %v804_v36 = vpop.f32.mrb[2].mxu0 }
 0x163   : > { %v805_v37 = vpop.f32.mrb[3].mxu0 }
 0x164   : > { %v806_v38 = vadd.f32 %v805_v37, %v804_v36  ;;  %v390_v39 = vadd.f32 %v803_v35, %v736_v34 }
 0x166   : > { %v393_v40 = vadd.f32 %v806_v38, %v736_v34  ;;  %v420_v42 = vmax.f32 %v390_v39, 0.0 }
 0x168   : > { %v807_v41 = vpop.f32.mrb[4].mxu0  ;;  %v421_v43 = vmax.f32 %v393_v40, 0.0 }
 0x169   : > { %v808_v44 = vpop.f32.mrb[5].mxu0 }
 0x16a   : > { %v809_v45 = vadd.f32 %v808_v44, %v807_v41  ;;  %v810_v46 = vpop.f32.mrb[6].mxu0  ;;  %v428_v47 = vpack.c.bf16 %v421_v43, %v420_v42 }
 0x16b   : > { %v811_v48 = vpop.f32.mrb[7].mxu0 }
 0x16c   : > { %v398_v49 = vadd.f32 %v809_v45, %v736_v34  ;;  %v812_v50 = vadd.f32 %v811_v48, %v810_v46  ;;  %853 = vmatprep.mubr.bf16.mxu1 %v428_v47 }
 0x16e   : > { %v401_v51 = vadd.f32 %v812_v50, %v736_v34  ;;  %v422_v52 = vmax.f32 %v398_v49, 0.0 }
 0x170   : > { %v423_v53 = vmax.f32 %v401_v51, 0.0  ;;  %v813_v54 = vpop.f32.mrb[8].mxu0 }
 0x171   : > { %v814_v55 = vpop.f32.mrb[9].mxu0 }
 0x172   : > { %v815_v56 = vadd.f32 %v814_v55, %v813_v54  ;;  %v816_v57 = vpop.f32.mrb[10].mxu0  ;;  %v429_v58 = vpack.c.bf16 %v423_v53, %v422_v52 }
 0x173   : > { %v817_v59 = vpop.f32.mrb[11].mxu0 }
 0x174   : > { %v406_v60 = vadd.f32 %v815_v56, %v736_v34  ;;  %v818_v61 = vadd.f32 %v817_v59, %v816_v57  ;;  %854 = vmatmul.mubr.bf16.vlgmr.msra.gmra.mrb[0].mxu1 %v429_v58 }
 0x176   : > { %v409_v62 = vadd.f32 %v818_v61, %v736_v34  ;;  %v424_v63 = vmax.f32 %v406_v60, 0.0 }
 0x178   : > { %v425_v0 = vmax.f32 %v409_v62, 0.0  ;;  %v819_v1 = vpop.f32.mrb[12].mxu0 }
 0x179   : > { %v820_v2 = vpop.f32.mrb[13].mxu0 }
 0x17a   : > { %v821_v3 = vadd.f32 %v820_v2, %v819_v1  ;;  %v822_v4 = vpop.f32.mrb[14].mxu0  ;;  %v430_v5 = vpack.c.bf16 %v425_v0, %v424_v63 }
 0x17b   : > { %v823_v6 = vpop.f32.mrb[15].mxu0 }
 0x17c   : > { %v414_v7 = vadd.f32 %v821_v3, %v736_v34  ;;  %v824_v8 = vadd.f32 %v823_v6, %v822_v4  ;;  %857 = vmatprep.mubr.bf16.mxu1 %v430_v5 }
 0x17e   : > { %v417_v9 = vadd.f32 %v824_v8, %v736_v34  ;;  %v426_v10 = vmax.f32 %v414_v7, 0.0 }
 0x180   : > { %v427_v11 = vmax.f32 %v417_v9, 0.0 }
 0x182   : > { %v431_v12 = vpack.c.bf16 %v427_v11, %v426_v10 }
 0x184   : > { %858 = vmatmul.mubr.bf16.gmra.mrb[4].mxu1 %v431_v12 }
 0x247   : > { %v855_v14 = vpop.f32.mrb[0].mxu1 }
 0x248   : > { %v506_v15 = vadd.f32 %v855_v14, %v737_v13  ;;  %v497_v16 = vpop.f32.mrb[1].mxu1 }
 0x249   : > { %v498_v17 = vadd.f32 %v737_v13, %v497_v16  ;;  %v856_v18 = vpop.f32.mrb[2].mxu1 }
 0x24a   : > { %v509_v19 = vadd.f32 %v856_v18, %v737_v13  ;;  %v500_v20 = vpop.f32.mrb[3].mxu1  ;;  %v530_v21 = vmul.f32 %v506_v15, %v506_v15 }
 0x24b   : > { %v501_v22 = vadd.f32 %v737_v13, %v500_v20  ;;  %v528_v23 = vmul.f32 %v498_v17, %v498_v17 }
 0x24c   : > { %540 = vadd.xlane.f32.xlu1 %v530_v21  ;;  %v531_v24 = vmul.f32 %v509_v19, %v509_v19 }
 0x24d   : > { %536 = vadd.xlane.f32.xlu0 %v528_v23  ;;  %v529_v25 = vmul.f32 %v501_v22, %v501_v22 }
 0x250   : > { %542 = vadd.xlane.f32.xlu1 %v531_v24 }
 0x251   : > { %538 = vadd.xlane.f32.xlu0 %v529_v25 }
 0x257   : > { %v859_v26 = vpop.f32.mrb[4].mxu1 }
 0x258   : > { %v513_v27 = vpop.f32.mrb[5].mxu1  ;;  %v522_v31 = vadd.f32 %v859_v26, %v737_v13 }
 0x259   : > { %v514_v28 = vadd.f32 %v737_v13, %v513_v27  ;;  %v860_v29 = vpop.f32.mrb[6].mxu1 }
 0x25a   : > { %v516_v30 = vpop.f32.mrb[7].mxu1  ;;  %v525_v34 = vadd.f32 %v860_v29, %v737_v13  ;;  %v534_v36 = vmul.f32 %v522_v31, %v522_v31 }
 0x25b   : > { %v517_v32 = vadd.f32 %v737_v13, %v516_v30  ;;  %v532_v33 = vmul.f32 %v514_v28, %v514_v28 }
 0x25c   : > { %v535_v37 = vmul.f32 %v525_v34, %v525_v34 }
 0x25d   : > { %544 = vadd.xlane.f32.xlu0 %v532_v33  ;;  %v533_v35 = vmul.f32 %v517_v32, %v517_v32 }
 0x25f   : > { %546 = vadd.xlane.f32.xlu1 %v533_v35 }
 0x261   : > { %548 = vadd.xlane.f32.xlu0 %v534_v36 }
 0x263   : > { %550 = vadd.xlane.f32.xlu1 %v535_v37 }
 0x2d9   : > { %v541_v38 = vpop.xlane.xlu1 %540 }
 0x2da   : > { %v554_v39 = vmax.f32 %v541_v38, 1e-24  ;;  %v537_v40 = vpop.xlane.xlu0 %536 }
 0x2db   : > { %v552_v41 = vmax.f32 %v537_v40, 1e-24 }
 0x2dc   : > { %934 = vrsqrt.f32 %v554_v39 }
 0x2dd   : > { %v543_v42 = vpop.xlane.xlu1 %542  ;;  %936 = vrsqrt.f32 %v552_v41 }
 0x2de   : > { %v555_v43 = vmax.f32 %v543_v42, 1e-24  ;;  %v539_v44 = vpop.xlane.xlu0 %538 }
 0x2df   : > { %v553_v45 = vmax.f32 %v539_v44, 1e-24 }
 0x2e0   : > { %938 = vrsqrt.f32 %v555_v43 }
 0x2e1   : > { %940 = vrsqrt.f32 %v553_v45 }
 0x2e6   : > { %v935_v46 = vpop.eup %934 }
 0x2e7   : > { %v937_v47 = vpop.eup %936  ;;  %v570_v51 = vmul.f32 %v935_v46, %v506_v15 }
 0x2e8   : > { %v568_v54 = vmul.f32 %v937_v47, %v498_v17 }
 0x2ea   : > { %v939_v48 = vpop.eup %938  ;;  %v545_v49 = vpop.xlane.xlu0 %544 }
 0x2eb   : > { %v941_v50 = vpop.eup %940  ;;  %v571_v52 = vmul.f32 %v939_v48, %v509_v19  ;;  %v556_v53 = vmax.f32 %v545_v49, 1e-24 }
 0x2ec   : > { %v569_v55 = vmul.f32 %v941_v50, %v501_v22  ;;  %v547_v56 = vpop.xlane.xlu1 %546 }
 0x2ed   : > { %v770_v57 = vpack.c.bf16 %v571_v52, %v570_v51  ;;  %942 = vrsqrt.f32 %v556_v53  ;;  %v557_v58 = vmax.f32 %v547_v56, 1e-24 }
 0x2ee   : > { %v765_v59 = vpack.c.bf16 %v569_v55, %v568_v54  ;;  %v549_v60 = vpop.xlane.xlu0 %548 }
 0x2ef   : > { %782 = vst [vmem:[%s272_s28 + $0x8] sm:$0xff] %v770_v57   ;;  %944 = vrsqrt.f32 %v557_v58  ;;  %v558_v61 = vmax.f32 %v549_v60, 1e-24 }
 0x2f0   : > { %766 = vst [vmem:[%s272_s28] sm:$0xff] %v765_v59   ;;  %v551_v62 = vpop.xlane.xlu1 %550 }
 0x2f1   : > { %946 = vrsqrt.f32 %v558_v61  ;;  %v559_v63 = vmax.f32 %v551_v62, 1e-24 }
 0x2f3   : > { %948 = vrsqrt.f32 %v559_v63 }
 0x2f7   : > { %v943_v0 = vpop.eup %942 }
 0x2f8   : > { %v572_v2 = vmul.f32 %v943_v0, %v514_v28 }
 0x2f9   : > { %v945_v1 = vpop.eup %944 }
 0x2fa   : > { %v573_v3 = vmul.f32 %v945_v1, %v517_v32 }
 0x2fb   : > { %v947_v4 = vpop.eup %946 }
 0x2fc   : > { %v775_v5 = vpack.c.bf16 %v573_v3, %v572_v2  ;;  %v574_v7 = vmul.f32 %v947_v4, %v522_v31 }
 0x2fd   : > { %v949_v6 = vpop.eup %948 }
 0x2fe   : > { %783 = vst [vmem:[%s272_s28 + $0x10] sm:$0xff] %v775_v5   ;;  %v575_v8 = vmul.f32 %v949_v6, %v525_v34 }
 0x300   : > { %v780_v9 = vpack.c.bf16 %v575_v8, %v574_v7 }
 0x302   : > { %784 = vst [vmem:[%s272_s28 + $0x18] sm:$0xff] %v780_v9  }
 0x303   : > { %1049 = shalt.err (!%p1046_p2)
}
 0x304   : > { %s1050_s24 = scalar_lea.hbm %s1361_s12, 512  ;;  %s1054_s10 = scalar_lea.hbm %s1412_s5, 1024 }
 0x305   : > { %p1051_p13 = scmp.ne.s32.totalorder %s1361_s12, %s1050_s24  ;;  %p1055_p4 = scmp.lt.u32.totalorder %s1361_s12, %s1412_s5 }
 0x306   : > { %p1056_p5 = scmp.lt.u32.totalorder %s1054_s10, %s1050_s24  ;;  %p1058_p11 = scmp.lt.u32.totalorder %s1050_s24, %s1361_s12 }
 0x307   : > { %p1052_p6 = pnand %p1051_p13, %p1426_p0 }
 0x308   : > { %p1057_p8 = por %p1056_p5, %p1055_p4 }
 0x309   : > { %p1053_p10 = pneg %p1052_p6 }
 0x30a   : > { %p1059_p1 = por %p1058_p11, %p1057_p8 }
 0x30c   : > { %p1060_p3 = pnand %p1059_p1, %p1053_p10 }
 0x30e   : > { %1063 = shalt.err (!%p1060_p3)
}
 0x30f   : > { %s1116_s30 = smov 64   ;;  %s1117_s16 = smov 4  }
 0x310   : > { %871 = dma.vmem_to_hbm [thread:$0]  (%p1426_p0), %s1363_s15, 512, %s1361_s12, %s617_s13, %s1116_s30, %s1116_s30, %s1117_s16  }
 0x311 PF: > { %s645_s9 = sand.u32 1, %s1094_s18   ;;  %p1427_p7 = scmp.ne.s32.totalorder %s1417_s25, 0 }
 0x312   : > { %p1428_p9 = scmp.ge.s32.totalorder %s1106_s21, 2  ;;  %s646_s17 = scalar_lea.sflag [#allocation4], %s645_s9 }
 0x314   : > { %p885_p12 = pnand %p1428_p9, %p1427_p7 }
 0x316   : > { %1089 = dma.done.wait (!%p885_p12), %s646_s17, 512  }
 0x317   : > { %1091 = vsyncadd (!%p885_p12), %s646_s17, 4294966784  ;;  %p19_p2 = scmp.ge.s32.totalorder %s1258_s14, 4   ;;  %s1429_s18 = smov %s1098_s19 }
 0x318   : > { %s1430_s19 = smov %s1102_s20  ;;  %s1431_s20 = smov %s1274_s27 }
 0x319   : > { %s1432_s21 = smov %s1258_s14  ;;  %21 = sbr.rel (!%p19_p2) target bundleno = 6 (0x6), region = 93 }
 0x320   :  { %651 = vsyncpa [#allocation3], 1 }
 0x321   :  { %653 = vsyncpa [#allocation3 + $0x1], 1 }
 0x322   :  { %654 = vsyncpa [#allocation6], 1 }
 0x323   :  { %655 = vsyncpa [#allocation4], 1 }
 0x324   :  { %657 = vsyncpa [#allocation4 + $0x1], 1 }

</bundles_post_ra>
